<compile_context>
chip_gen: v6e
topology: v6e:2x2x1
jax: 0.10.0
libtpu: 0.0.40
codegen_flags: <defaults>
</compile_context>

<pallas_src>
import functools
import math

import numpy as np
import jax
import jax.numpy as jnp
from jax import lax
from jax.experimental import pallas as pl
from jax.experimental.pallas import tpu as pltpu

_NEG_BIG = -1e30


def _round_up(x, m):
    return ((x + m - 1) // m) * m


def _supcon_tile_kernel(feat_row_ref, feat_col_ref, lab_row_ref, lab_col_ref,
                        w_ref, loss_ref, wout_ref,
                        m_ref, l_ref, sma_ref, sm_ref, *,
                        temperature, base_temperature, n_valid,
                        block_q, block_k, padded):
    i = pl.program_id(0)           # anchor tile (anchors live on the lane axis)
    k = pl.program_id(1)           # contrast tile (reduction axis)
    nk = pl.num_programs(1)

    @pl.when(k == 0)
    def _init():
        m_ref[...] = jnp.full_like(m_ref, _NEG_BIG)
        l_ref[...] = jnp.zeros_like(l_ref)
        sma_ref[...] = jnp.zeros_like(sma_ref)
        sm_ref[...] = jnp.zeros_like(sm_ref)

    # s[c, q] = <contrast_c, anchor_q> / T  (1/T folded into the bf16 operands).
    # Transposed orientation: per-anchor stats reduce over the SUBLANE axis and
    # stay lane-dense [1, block_q] -> unmasked lane-dense output stores.
    s = lax.dot_general(feat_col_ref[...], feat_row_ref[...],
                        (((1,), (1,)), ((), ())),
                        preferred_element_type=jnp.float32)      # [TK, TQ] f32

    # Shared online-softmax bookkeeping.  The running max is only for numerical
    # stability; log Z = m + log(l) is independent of it, so including the
    # diagonal / zero-padded columns in the max is harmless.
    m_prev = m_ref[...]                                          # [1, TQ]
    m_new = jnp.maximum(m_prev, jnp.max(s, axis=0, keepdims=True))
    alpha = jnp.exp(m_prev - m_new)
    e = jnp.exp(s - m_new)                                       # [TK, TQ]
    pos = lab_col_ref[...] == lab_row_ref[...]                   # [TK, TQ] bool
    m_ref[...] = m_new
    l_scaled = alpha * l_ref[...]
    sma_prev = sma_ref[...]
    sm_prev = sm_ref[...]

    row_start = i * block_q
    col_start = k * block_k
    has_diag = jnp.logical_and(row_start < col_start + block_k,
                               col_start < row_start + block_q)
    if padded:
        has_pad_cols = (k + 1) * block_k > n_valid   # tile holds padded columns
        needs_mask = jnp.logical_or(has_diag, has_pad_cols)
    else:
        needs_mask = has_diag

    # Fast path for interior tiles: no diagonal, no padding -> no [TK,TQ] mask
    # construction at all (saves several full-tile VPU passes per step).
    # TODO(synk): if a bundle dump shows the XLU saturating, the two mask
    # reductions below could be offloaded to the MXU via a ones-vector dot.
    @pl.when(jnp.logical_not(needs_mask))
    def _interior():
        l_ref[...] = l_scaled + jnp.sum(e, axis=0, keepdims=True)
        sma_ref[...] = sma_prev + jnp.sum(jnp.where(pos, s, 0.0),
                                          axis=0, keepdims=True)
        sm_ref[...] = sm_prev + jnp.sum(jnp.where(pos, 1.0, 0.0),
                                        axis=0, keepdims=True)

    # Boundary tiles (touch the diagonal and/or padded columns): full masking.
    @pl.when(needs_mask)
    def _boundary():
        row_idx = row_start + lax.broadcasted_iota(jnp.int32, (1, block_q), 1)
        col_idx = col_start + lax.broadcasted_iota(jnp.int32, (block_k, 1), 0)
        keep = col_idx != row_idx                                # drop diagonal
        if padded:
            keep = jnp.logical_and(keep, col_idx < n_valid)      # drop padding
        posk = jnp.logical_and(pos, keep)
        l_ref[...] = l_scaled + jnp.sum(jnp.where(keep, e, 0.0),
                                        axis=0, keepdims=True)
        sma_ref[...] = sma_prev + jnp.sum(jnp.where(posk, s, 0.0),
                                          axis=0, keepdims=True)
        sm_ref[...] = sm_prev + jnp.sum(jnp.where(posk, 1.0, 0.0),
                                        axis=0, keepdims=True)

    @pl.when(k == nk - 1)
    def _finalize():
        sm = sm_ref[...]
        log_z = m_ref[...] + jnp.log(l_ref[...])
        mpp = jnp.where(sm < 1e-6, 1.0, sm)
        # sum(mask*log_prob)/mpp == (sum(mask*s) - sum(mask)*log Z) / mpp.
        # Exact divide: this path runs once per anchor tile.
        mean_lpp = (sma_ref[...] - sm * log_z) / mpp
        w = w_ref[...]                        # padded anchors carry w == 0
        loss_ref[...] = (-(temperature / base_temperature)) * mean_lpp * w
        wout_ref[...] = w


def weighted_supcon_loss(features, labels, *, temperature=0.07,
                         base_temperature=0.07, gamma=1.0,
                         block_q=512, block_k=512):
    """features: [B, V, D] float, labels: [B] int. Returns scalar f32 loss.

    block_q/block_k default to 512x512, which fits comfortably under the
    48 MiB scoped-VMEM budget on every generation (including v7x's 64 MiB
    cards) and feeds the 256-wide MXUs on v6e/v7x; block_k can be raised to
    1024 on v6e if desired.
    """
    features = jnp.asarray(features, dtype=jnp.float32)
    B, V, D = features.shape
    N = V * B

    # contrast_feature = cat(unbind(features, dim=1), dim=0) -> view-major [N, D]
    contrast = jnp.transpose(features, (1, 0, 2)).reshape(N, D)

    labels = jnp.asarray(labels).reshape(-1).astype(jnp.int32)
    labels_full = jnp.tile(labels, V)        # label of row v*B + b is labels[b]

    # ---- per-anchor cluster weights: O(N*C*D), hoisted out of the kernel ----
    # TODO(synk): np.unique needs concrete labels (not jit-traceable); pass a
    # static num_classes + segment sums to make this wrapper jittable.
    uniq = np.unique(np.asarray(labels))
    uniq_dev = jnp.asarray(uniq)
    one_hot = (labels[None, :] == uniq_dev[:, None]).astype(jnp.float32)  # [C,B]
    counts = jnp.sum(one_hot, axis=1, keepdims=True)
    clusters = (one_hot @ jnp.mean(features, axis=1)) / counts            # [C,D]
    adcl = jnp.matmul(contrast, clusters.T, precision='highest')          # [N,C]
    probs = jax.nn.softmax(adcl, axis=1)
    if uniq.shape[0] >= 2:
        top2, _ = jax.lax.top_k(probs, 2)
        w = jnp.clip(1.0 - (top2[:, 0] - top2[:, 1]), 0.0, 1.0)
    else:
        # TODO(synk): single-class batches are degenerate in the reference too
        # (it indexes a non-existent second column); weights collapse to 0.
        w = jnp.zeros((N,), jnp.float32)
    if gamma != 1.0:
        w = w ** gamma

    # Fold 1/T into the bf16 MXU operands: (f/sqrt(T)) @ (f/sqrt(T)).T == f@f.T/T
    inv_sqrt_t = 1.0 / float(np.sqrt(temperature))
    feat_bf16 = (contrast * inv_sqrt_t).astype(jnp.bfloat16)

    # Tile selection: single 8-aligned tile for small N; 512x512 otherwise.
    if N <= max(block_q, block_k):
        block_q = block_k = _round_up(N, 8)
    else:
        assert block_q % 128 == 0 and block_k % 8 == 0, (
            "multi-tile block_q must be a multiple of 128, block_k of 8")
    n_pad = _round_up(N, block_q * block_k // math.gcd(block_q, block_k))

    feat_p = jnp.pad(feat_bf16, ((0, n_pad - N), (0, 0)))
    lab_p = jnp.pad(labels_full, (0, n_pad - N), constant_values=-1)
    lab_col = lab_p.reshape(n_pad, 1)        # contrast labels, sublane-major
    lab_row = lab_p.reshape(1, n_pad)        # anchor labels, lane-major
    w_p = jnp.pad(w, (0, n_pad - N)).reshape(1, n_pad)   # padded anchors -> 0

    nq = n_pad // block_q
    nk = n_pad // block_k
    kernel = functools.partial(
        _supcon_tile_kernel,
        temperature=float(temperature),
        base_temperature=float(base_temperature),
        n_valid=N, block_q=block_q, block_k=block_k,
        padded=(n_pad != N))

    cost = pl.CostEstimate(
        flops=int(2 * n_pad * n_pad * D),
        transcendentals=int(n_pad * n_pad),
        bytes_accessed=int((nq + 1) * n_pad * D * 2 + 6 * n_pad * 4))

    loss_rows, w_rows = pl.pallas_call(
        kernel,
        out_shape=(jax.ShapeDtypeStruct((1, n_pad), jnp.float32),
                   jax.ShapeDtypeStruct((1, n_pad), jnp.float32)),
        grid_spec=pltpu.PrefetchScalarGridSpec(
            num_scalar_prefetch=0,
            grid=(nq, nk),
            in_specs=[
                # anchors: k-invariant index map -> stays VMEM-resident per row tile
                pl.BlockSpec((block_q, D), lambda i, k: (i, 0)),
                # contrast columns: the only per-step streamed tensor.
                # TODO(synk): add pipeline_mode=pl.Buffered(3) here if profiling
                # shows this DMA exposed at large block_k.
                pl.BlockSpec((block_k, D), lambda i, k: (k, 0)),
                pl.BlockSpec((1, block_q), lambda i, k: (0, i)),   # anchor labels
                pl.BlockSpec((block_k, 1), lambda i, k: (k, 0)),   # contrast labels
                pl.BlockSpec((1, block_q), lambda i, k: (0, i)),   # anchor weights
            ],
            out_specs=[
                pl.BlockSpec((1, block_q), lambda i, k: (0, i)),   # per-anchor loss
                pl.BlockSpec((1, block_q), lambda i, k: (0, i)),   # per-anchor weight
            ],
            scratch_shapes=[pltpu.VMEM((1, block_q), jnp.float32)] * 4),
        compiler_params=pltpu.CompilerParams(
            dimension_semantics=("parallel", "arbitrary"),
            vmem_limit_bytes=48 * 1024 * 1024),
        cost_estimate=cost,
    )(feat_p, feat_p, lab_row, lab_col, w_p)

    # Tiny final reduction in JAX (padded anchors contribute 0 to both sums).
    return jnp.sum(loss_rows) / jnp.sum(w_rows)


def _reference_loss(features, labels, temperature=0.07, base_temperature=0.07,
                    gamma=1.0):
    """Pure-JAX port of the PyTorch forward (labels path, contrast_mode='all')."""
    B, V, D = features.shape
    N = V * B
    labels = labels.reshape(-1, 1)
    mask = (labels == labels.T).astype(jnp.float32)
    contrast_feature = jnp.concatenate([features[:, v] for v in range(V)], axis=0)
    anchor_feature = contrast_feature
    adc = jnp.matmul(anchor_feature, contrast_feature.T, precision='highest') / temperature

    uniq = np.unique(np.asarray(labels))
    centers = []
    for lab in uniq:
        idx = np.nonzero(np.asarray(labels).reshape(-1) == lab)[0]
        centers.append(jnp.mean(jnp.mean(features[idx], axis=1), axis=0))
    clusters = jnp.stack(centers)

    adcl = jnp.matmul(anchor_feature, clusters.T, precision='highest')
    probs = jax.nn.softmax(adcl, axis=1)
    sp = jnp.sort(probs, axis=1)[:, ::-1]
    weights = jnp.clip(1.0 - (sp[:, 0] - sp[:, 1]), 0.0, 1.0) ** gamma

    logits = adc - jnp.max(adc, axis=1, keepdims=True)
    mask = jnp.tile(mask, (V, V))
    logits_mask = 1.0 - jnp.eye(N, dtype=jnp.float32)
    mask = mask * logits_mask
    exp_logits = jnp.exp(logits) * logits_mask
    log_prob = logits - jnp.log(jnp.sum(exp_logits, axis=1, keepdims=True))
    mpp = jnp.sum(mask, axis=1)
    mpp = jnp.where(mpp < 1e-6, 1.0, mpp)
    mean_log_prob_pos = jnp.sum(mask * log_prob, axis=1) / mpp
    loss = -(temperature / base_temperature) * mean_log_prob_pos * weights
    return jnp.sum(loss) / jnp.sum(weights)


if __name__ == "__main__":
    key = jax.random.PRNGKey(0)
    k1, k2, k3 = jax.random.split(key, 3)

    # --- test 1: small, single-tile path (N = 16) ----------------------------
    B, V, D = 8, 2, 128
    feats = jax.random.normal(k1, (B, V, D), dtype=jnp.float32)
    feats = feats / jnp.linalg.norm(feats, axis=-1, keepdims=True)
    labels = jnp.array([0, 1, 2, 3, 0, 1, 2, 3], dtype=jnp.int32)

    loss = jax.block_until_ready(weighted_supcon_loss(feats, labels))
    ref = jax.block_until_ready(_reference_loss(feats, labels))
    assert np.isfinite(float(loss)), "kernel produced non-finite loss"
    assert np.allclose(float(loss), float(ref), rtol=2e-2, atol=2e-2), (
        f"mismatch (small): kernel={float(loss)} ref={float(ref)}")

    # --- test 2: multi-tile streaming + padding path (N = 640 -> 1024, 2x2 grid)
    B2, V2, D2 = 320, 2, 128
    feats2 = jax.random.normal(k2, (B2, V2, D2), dtype=jnp.float32)
    feats2 = feats2 / jnp.linalg.norm(feats2, axis=-1, keepdims=True)
    labels2 = (jnp.arange(B2) % 6).astype(jnp.int32)

    loss2 = jax.block_until_ready(weighted_supcon_loss(feats2, labels2))
    ref2 = jax.block_until_ready(_reference_loss(feats2, labels2))
    assert np.isfinite(float(loss2)), "kernel produced non-finite loss (padded)"
    assert np.allclose(float(loss2), float(ref2), rtol=2e-2, atol=2e-2), (
        f"mismatch (padded): kernel={float(loss2)} ref={float(ref2)}")

    # --- test 3: multi-tile, exactly tiled (N = 1024, no padding, 2x2 grid) ---
    B3, V3, D3 = 512, 2, 128
    feats3 = jax.random.normal(k3, (B3, V3, D3), dtype=jnp.float32)
    feats3 = feats3 / jnp.linalg.norm(feats3, axis=-1, keepdims=True)
    labels3 = (jnp.arange(B3) % 10).astype(jnp.int32)

    loss3 = jax.block_until_ready(weighted_supcon_loss(feats3, labels3))
    ref3 = jax.block_until_ready(_reference_loss(feats3, labels3))
    assert np.isfinite(float(loss3)), "kernel produced non-finite loss (tiled)"
    assert np.allclose(float(loss3), float(ref3), rtol=2e-2, atol=2e-2), (
        f"mismatch (tiled): kernel={float(loss3)} ref={float(ref3)}")

    # TODO(synk): labels-less (SimCLR) path uses sklearn KMeans for cluster
    # centers; contrast_mode='one' and explicit-mask branches are not implemented.
    print("KERNEL_OK")
</pallas_src>

<mosaic_0001>
module attributes {stable_mosaic.version = 11 : i64} {
  func.func @_supcon_tile_kernel(%arg0: i32, %arg1: i32, %arg2: memref<16x128xbf16, #tpu.memory_space<vmem>>, %arg3: memref<16x128xbf16, #tpu.memory_space<vmem>>, %arg4: memref<1x16xi32, #tpu.memory_space<vmem>>, %arg5: memref<16x1xi32, #tpu.memory_space<vmem>>, %arg6: memref<1x16xf32, #tpu.memory_space<vmem>>, %arg7: memref<1x16xf32, #tpu.memory_space<vmem>>, %arg8: memref<1x16xf32, #tpu.memory_space<vmem>>, %arg9: memref<1x16xf32, #tpu.memory_space<vmem>>, %arg10: memref<1x16xf32, #tpu.memory_space<vmem>>, %arg11: memref<1x16xf32, #tpu.memory_space<vmem>>, %arg12: memref<1x16xf32, #tpu.memory_space<vmem>>) attributes {dimension_semantics = [#tpu.dimension_semantics<parallel>, #tpu.dimension_semantics<arbitrary>], iteration_bounds = array<i64: 1, 1>, scalar_prefetch = 0 : i64, scratch_operands = 4 : i64, tpu.core_type = #tpu.core_type<tc>, window_params = [{transform_indices = @transform_0, window_bounds = array<i64: 16, 128>}, {transform_indices = @transform_1, window_bounds = array<i64: 16, 128>}, {transform_indices = @transform_2, window_bounds = array<i64: 1, 16>}, {transform_indices = @transform_3, window_bounds = array<i64: 16, 1>}, {transform_indices = @transform_4, window_bounds = array<i64: 1, 16>}, {transform_indices = @transform_5, window_bounds = array<i64: 1, 16>}, {transform_indices = @transform_6, window_bounds = array<i64: 1, 16>}]} {
    %c0_i32 = arith.constant 0 : i32
    %0 = arith.cmpi eq, %arg1, %c0_i32 : i32
    %1 = arith.extui %0 : i1 to i32
    %c0_i32_0 = arith.constant 0 : i32
    %2 = arith.cmpi ne, %1, %c0_i32_0 : i32
    scf.if %2 {
      %cst_26 = arith.constant -1.000000e+30 : f32
      %40 = vector.broadcast %cst_26 : f32 to vector<1x16xf32>
      %c0_27 = arith.constant 0 : index
      %c0_28 = arith.constant 0 : index
      %41 = vector.load %arg9[%c0_27, %c0_28] : memref<1x16xf32, #tpu.memory_space<vmem>>, vector<1x16xf32>
      tpu.vector_store %arg9[%c0_27, %c0_28], %40 {strides = array<i32>} : memref<1x16xf32, #tpu.memory_space<vmem>>, vector<1x16xf32>,
      %cst_29 = arith.constant 0.000000e+00 : f32
      %42 = vector.broadcast %cst_29 : f32 to vector<1x16xf32>
      %c0_30 = arith.constant 0 : index
      %c0_31 = arith.constant 0 : index
      %43 = vector.load %arg10[%c0_30, %c0_31] : memref<1x16xf32, #tpu.memory_space<vmem>>, vector<1x16xf32>
      tpu.vector_store %arg10[%c0_30, %c0_31], %42 {strides = array<i32>} : memref<1x16xf32, #tpu.memory_space<vmem>>, vector<1x16xf32>,
      %cst_32 = arith.constant 0.000000e+00 : f32
      %44 = vector.broadcast %cst_32 : f32 to vector<1x16xf32>
      %c0_33 = arith.constant 0 : index
      %c0_34 = arith.constant 0 : index
      %45 = vector.load %arg11[%c0_33, %c0_34] : memref<1x16xf32, #tpu.memory_space<vmem>>, vector<1x16xf32>
      tpu.vector_store %arg11[%c0_33, %c0_34], %44 {strides = array<i32>} : memref<1x16xf32, #tpu.memory_space<vmem>>, vector<1x16xf32>,
      %cst_35 = arith.constant 0.000000e+00 : f32
      %46 = vector.broadcast %cst_35 : f32 to vector<1x16xf32>
      %c0_36 = arith.constant 0 : index
      %c0_37 = arith.constant 0 : index
      %47 = vector.load %arg12[%c0_36, %c0_37] : memref<1x16xf32, #tpu.memory_space<vmem>>, vector<1x16xf32>
      tpu.vector_store %arg12[%c0_36, %c0_37], %46 {strides = array<i32>} : memref<1x16xf32, #tpu.memory_space<vmem>>, vector<1x16xf32>,
    } else {
    }
    %c0 = arith.constant 0 : index
    %c0_1 = arith.constant 0 : index
    %3 = vector.load %arg3[%c0, %c0_1] : memref<16x128xbf16, #tpu.memory_space<vmem>>, vector<16x128xbf16>
    %c0_2 = arith.constant 0 : index
    %c0_3 = arith.constant 0 : index
    %4 = vector.load %arg2[%c0_2, %c0_3] : memref<16x128xbf16, #tpu.memory_space<vmem>>, vector<16x128xbf16>
    %cst = arith.constant dense<0.000000e+00> : vector<16x16xf32>
    %5 = tpu.matmul %3, %4, %cst {dimension_numbers = #tpu.dot_dimension_numbers<[1], [1], [0], [0], [0, 0, 1, 0], [], []>} : vector<16x128xbf16>, vector<16x128xbf16>, vector<16x16xf32> -> vector<16x16xf32>
    %c0_4 = arith.constant 0 : index
    %c0_5 = arith.constant 0 : index
    %6 = vector.load %arg9[%c0_4, %c0_5] : memref<1x16xf32, #tpu.memory_space<vmem>>, vector<1x16xf32>
    %cst_6 = arith.constant dense<0xFF800000> : vector<16xf32>
    %7 = vector.multi_reduction <maximumf>, %5, %cst_6 [0] : vector<16x16xf32> to vector<16xf32>
    %8 = vector.shape_cast %7 : vector<16xf32> to vector<1x16xf32>
    %9 = arith.maximumf %6, %8 : vector<1x16xf32>
    %10 = arith.subf %6, %9 : vector<1x16xf32>
    %11 = math.exp %10 : vector<1x16xf32>
    %12 = vector.broadcast %9 : vector<1x16xf32> to vector<16x16xf32>
    %13 = arith.subf %5, %12 : vector<16x16xf32>
    %14 = math.exp %13 : vector<16x16xf32>
    %c0_7 = arith.constant 0 : index
    %c0_8 = arith.constant 0 : index
    %15 = vector.load %arg5[%c0_7, %c0_8] : memref<16x1xi32, #tpu.memory_space<vmem>>, vector<16x1xi32>
    %c0_9 = arith.constant 0 : index
    %c0_10 = arith.constant 0 : index
    %16 = vector.load %arg4[%c0_9, %c0_10] : memref<1x16xi32, #tpu.memory_space<vmem>>, vector<1x16xi32>
    %17 = vector.broadcast %15 : vector<16x1xi32> to vector<16x16xi32>
    %18 = vector.broadcast %16 : vector<1x16xi32> to vector<16x16xi32>
    %19 = arith.cmpi eq, %17, %18 : vector<16x16xi32>
    %c0_11 = arith.constant 0 : index
    %c0_12 = arith.constant 0 : index
    %20 = vector.load %arg9[%c0_11, %c0_12] : memref<1x16xf32, #tpu.memory_space<vmem>>, vector<1x16xf32>
    tpu.vector_store %arg9[%c0_11, %c0_12], %9 {strides = array<i32>} : memref<1x16xf32, #tpu.memory_space<vmem>>, vector<1x16xf32>,
    %c0_13 = arith.constant 0 : index
    %c0_14 = arith.constant 0 : index
    %21 = vector.load %arg10[%c0_13, %c0_14] : memref<1x16xf32, #tpu.memory_space<vmem>>, vector<1x16xf32>
    %22 = arith.mulf %11, %21 : vector<1x16xf32>
    %c0_15 = arith.constant 0 : index
    %c0_16 = arith.constant 0 : index
    %23 = vector.load %arg11[%c0_15, %c0_16] : memref<1x16xf32, #tpu.memory_space<vmem>>, vector<1x16xf32>
    %c0_17 = arith.constant 0 : index
    %c0_18 = arith.constant 0 : index
    %24 = vector.load %arg12[%c0_17, %c0_18] : memref<1x16xf32, #tpu.memory_space<vmem>>, vector<1x16xf32>
    %c16_i32 = arith.constant 16 : i32
    %25 = arith.muli %arg0, %c16_i32 : i32
    %c16_i32_19 = arith.constant 16 : i32
    %26 = arith.muli %arg1, %c16_i32_19 : i32
    %c16_i32_20 = arith.constant 16 : i32
    %27 = arith.addi %26, %c16_i32_20 : i32
    %28 = arith.cmpi slt, %25, %27 : i32
    %c16_i32_21 = arith.constant 16 : i32
    %29 = arith.addi %25, %c16_i32_21 : i32
    %30 = arith.cmpi slt, %26, %29 : i32
    %31 = arith.andi %28, %30 : i1
    %true = arith.constant true
    %32 = arith.xori %31, %true : i1
    %33 = arith.extui %32 : i1 to i32
    %c0_i32_22 = arith.constant 0 : i32
    %34 = arith.cmpi ne, %33, %c0_i32_22 : i32
    scf.if %34 {
      %cst_26 = arith.constant dense<0.000000e+00> : vector<16xf32>
      %40 = vector.multi_reduction <add>, %14, %cst_26 [0] : vector<16x16xf32> to vector<16xf32>
      %41 = vector.shape_cast %40 : vector<16xf32> to vector<1x16xf32>
      %42 = arith.addf %22, %41 : vector<1x16xf32>
      %c0_27 = arith.constant 0 : index
      %c0_28 = arith.constant 0 : index
      %43 = vector.load %arg10[%c0_27, %c0_28] : memref<1x16xf32, #tpu.memory_space<vmem>>, vector<1x16xf32>
      tpu.vector_store %arg10[%c0_27, %c0_28], %42 {strides = array<i32>} : memref<1x16xf32, #tpu.memory_space<vmem>>, vector<1x16xf32>,
      %cst_29 = arith.constant 0.000000e+00 : f32
      %44 = vector.broadcast %cst_29 : f32 to vector<16x16xf32>
      %45 = arith.select %19, %5, %44 : vector<16x16xi1>, vector<16x16xf32>
      %cst_30 = arith.constant dense<0.000000e+00> : vector<16xf32>
      %46 = vector.multi_reduction <add>, %45, %cst_30 [0] : vector<16x16xf32> to vector<16xf32>
      %47 = vector.shape_cast %46 : vector<16xf32> to vector<1x16xf32>
      %48 = arith.addf %23, %47 : vector<1x16xf32>
      %c0_31 = arith.constant 0 : index
      %c0_32 = arith.constant 0 : index
      %49 = vector.load %arg11[%c0_31, %c0_32] : memref<1x16xf32, #tpu.memory_space<vmem>>, vector<1x16xf32>
      tpu.vector_store %arg11[%c0_31, %c0_32], %48 {strides = array<i32>} : memref<1x16xf32, #tpu.memory_space<vmem>>, vector<1x16xf32>,
      %cst_33 = arith.constant 1.000000e+00 : f32
      %cst_34 = arith.constant 0.000000e+00 : f32
      %50 = vector.broadcast %cst_33 : f32 to vector<16x16xf32>
      %51 = vector.broadcast %cst_34 : f32 to vector<16x16xf32>
      %52 = arith.select %19, %50, %51 : vector<16x16xi1>, vector<16x16xf32>
      %cst_35 = arith.constant dense<0.000000e+00> : vector<16xf32>
      %53 = vector.multi_reduction <add>, %52, %cst_35 [0] : vector<16x16xf32> to vector<16xf32>
      %54 = vector.shape_cast %53 : vector<16xf32> to vector<1x16xf32>
      %55 = arith.addf %24, %54 : vector<1x16xf32>
      %c0_36 = arith.constant 0 : index
      %c0_37 = arith.constant 0 : index
      %56 = vector.load %arg12[%c0_36, %c0_37] : memref<1x16xf32, #tpu.memory_space<vmem>>, vector<1x16xf32>
      tpu.vector_store %arg12[%c0_36, %c0_37], %55 {strides = array<i32>} : memref<1x16xf32, #tpu.memory_space<vmem>>, vector<1x16xf32>,
    } else {
    }
    %35 = arith.extui %31 : i1 to i32
    %c0_i32_23 = arith.constant 0 : i32
    %36 = arith.cmpi ne, %35, %c0_i32_23 : i32
    scf.if %36 {
      %40 = tpu.iota {dimensions = array<i32: 1>} : vector<1x16xi32>
      %41 = vector.broadcast %25 : i32 to vector<1x16xi32>
      %42 = arith.addi %41, %40 : vector<1x16xi32>
      %43 = tpu.iota {dimensions = array<i32: 0>} : vector<16x1xi32>
      %44 = vector.broadcast %26 : i32 to vector<16x1xi32>
      %45 = arith.addi %44, %43 : vector<16x1xi32>
      %46 = vector.broadcast %45 : vector<16x1xi32> to vector<16x16xi32>
      %47 = vector.broadcast %42 : vector<1x16xi32> to vector<16x16xi32>
      %48 = arith.cmpi ne, %46, %47 : vector<16x16xi32>
      %49 = arith.andi %19, %48 : vector<16x16xi1>
      %cst_26 = arith.constant 0.000000e+00 : f32
      %50 = vector.broadcast %cst_26 : f32 to vector<16x16xf32>
      %51 = arith.select %48, %14, %50 : vector<16x16xi1>, vector<16x16xf32>
      %cst_27 = arith.constant dense<0.000000e+00> : vector<16xf32>
      %52 = vector.multi_reduction <add>, %51, %cst_27 [0] : vector<16x16xf32> to vector<16xf32>
      %53 = vector.shape_cast %52 : vector<16xf32> to vector<1x16xf32>
      %54 = arith.addf %22, %53 : vector<1x16xf32>
      %c0_28 = arith.constant 0 : index
      %c0_29 = arith.constant 0 : index
      %55 = vector.load %arg10[%c0_28, %c0_29] : memref<1x16xf32, #tpu.memory_space<vmem>>, vector<1x16xf32>
      tpu.vector_store %arg10[%c0_28, %c0_29], %54 {strides = array<i32>} : memref<1x16xf32, #tpu.memory_space<vmem>>, vector<1x16xf32>,
      %cst_30 = arith.constant 0.000000e+00 : f32
      %56 = vector.broadcast %cst_30 : f32 to vector<16x16xf32>
      %57 = arith.select %49, %5, %56 : vector<16x16xi1>, vector<16x16xf32>
      %cst_31 = arith.constant dense<0.000000e+00> : vector<16xf32>
      %58 = vector.multi_reduction <add>, %57, %cst_31 [0] : vector<16x16xf32> to vector<16xf32>
      %59 = vector.shape_cast %58 : vector<16xf32> to vector<1x16xf32>
      %60 = arith.addf %23, %59 : vector<1x16xf32>
      %c0_32 = arith.constant 0 : index
      %c0_33 = arith.constant 0 : index
      %61 = vector.load %arg11[%c0_32, %c0_33] : memref<1x16xf32, #tpu.memory_space<vmem>>, vector<1x16xf32>
      tpu.vector_store %arg11[%c0_32, %c0_33], %60 {strides = array<i32>} : memref<1x16xf32, #tpu.memory_space<vmem>>, vector<1x16xf32>,
      %cst_34 = arith.constant 1.000000e+00 : f32
      %cst_35 = arith.constant 0.000000e+00 : f32
      %62 = vector.broadcast %cst_34 : f32 to vector<16x16xf32>
      %63 = vector.broadcast %cst_35 : f32 to vector<16x16xf32>
      %64 = arith.select %49, %62, %63 : vector<16x16xi1>, vector<16x16xf32>
      %cst_36 = arith.constant dense<0.000000e+00> : vector<16xf32>
      %65 = vector.multi_reduction <add>, %64, %cst_36 [0] : vector<16x16xf32> to vector<16xf32>
      %66 = vector.shape_cast %65 : vector<16xf32> to vector<1x16xf32>
      %67 = arith.addf %24, %66 : vector<1x16xf32>
      %c0_37 = arith.constant 0 : index
      %c0_38 = arith.constant 0 : index
      %68 = vector.load %arg12[%c0_37, %c0_38] : memref<1x16xf32, #tpu.memory_space<vmem>>, vector<1x16xf32>
      tpu.vector_store %arg12[%c0_37, %c0_38], %67 {strides = array<i32>} : memref<1x16xf32, #tpu.memory_space<vmem>>, vector<1x16xf32>,
    } else {
    }
    %c0_i32_24 = arith.constant 0 : i32
    %37 = arith.cmpi eq, %arg1, %c0_i32_24 : i32
    %38 = arith.extui %37 : i1 to i32
    %c0_i32_25 = arith.constant 0 : i32
    %39 = arith.cmpi ne, %38, %c0_i32_25 : i32
    scf.if %39 {
      %c0_26 = arith.constant 0 : index
      %c0_27 = arith.constant 0 : index
      %40 = vector.load %arg12[%c0_26, %c0_27] : memref<1x16xf32, #tpu.memory_space<vmem>>, vector<1x16xf32>
      %c0_28 = arith.constant 0 : index
      %c0_29 = arith.constant 0 : index
      %41 = vector.load %arg9[%c0_28, %c0_29] : memref<1x16xf32, #tpu.memory_space<vmem>>, vector<1x16xf32>
      %c0_30 = arith.constant 0 : index
      %c0_31 = arith.constant 0 : index
      %42 = vector.load %arg10[%c0_30, %c0_31] : memref<1x16xf32, #tpu.memory_space<vmem>>, vector<1x16xf32>
      %43 = math.log %42 : vector<1x16xf32>
      %44 = arith.addf %41, %43 : vector<1x16xf32>
      %cst_32 = arith.constant 9.99999997E-7 : f32
      %45 = vector.broadcast %cst_32 : f32 to vector<1x16xf32>
      %46 = arith.cmpf olt, %40, %45 : vector<1x16xf32>
      %cst_33 = arith.constant 1.000000e+00 : f32
      %47 = vector.broadcast %cst_33 : f32 to vector<1x16xf32>
      %48 = arith.select %46, %47, %40 : vector<1x16xi1>, vector<1x16xf32>
      %c0_34 = arith.constant 0 : index
      %c0_35 = arith.constant 0 : index
      %49 = vector.load %arg11[%c0_34, %c0_35] : memref<1x16xf32, #tpu.memory_space<vmem>>, vector<1x16xf32>
      %50 = arith.mulf %40, %44 : vector<1x16xf32>
      %51 = arith.subf %49, %50 : vector<1x16xf32>
      %52 = arith.divf %51, %48 : vector<1x16xf32>
      %c0_36 = arith.constant 0 : index
      %c0_37 = arith.constant 0 : index
      %53 = vector.load %arg6[%c0_36, %c0_37] : memref<1x16xf32, #tpu.memory_space<vmem>>, vector<1x16xf32>
      %cst_38 = arith.constant -1.000000e+00 : f32
      %54 = vector.broadcast %cst_38 : f32 to vector<1x16xf32>
      %55 = arith.mulf %54, %52 : vector<1x16xf32>
      %56 = arith.mulf %55, %53 : vector<1x16xf32>
      %c0_39 = arith.constant 0 : index
      %c0_40 = arith.constant 0 : index
      %57 = vector.load %arg7[%c0_39, %c0_40] : memref<1x16xf32, #tpu.memory_space<vmem>>, vector<1x16xf32>
      tpu.vector_store %arg7[%c0_39, %c0_40], %56 {strides = array<i32>} : memref<1x16xf32, #tpu.memory_space<vmem>>, vector<1x16xf32>,
      %c0_41 = arith.constant 0 : index
      %c0_42 = arith.constant 0 : index
      %58 = vector.load %arg8[%c0_41, %c0_42] : memref<1x16xf32, #tpu.memory_space<vmem>>, vector<1x16xf32>
      tpu.vector_store %arg8[%c0_41, %c0_42], %53 {strides = array<i32>} : memref<1x16xf32, #tpu.memory_space<vmem>>, vector<1x16xf32>,
    } else {
    }
    return
  }
  func.func @transform_0(%arg0: i32, %arg1: i32) -> (i32, i32) {
    %c0_i32 = arith.constant 0 : i32
    %c0_i32_0 = arith.constant 0 : i32
    return %arg0, %c0_i32 : i32, i32
  }
  func.func @transform_1(%arg0: i32, %arg1: i32) -> (i32, i32) {
    %c0_i32 = arith.constant 0 : i32
    %c0_i32_0 = arith.constant 0 : i32
    return %arg1, %c0_i32 : i32, i32
  }
  func.func @transform_2(%arg0: i32, %arg1: i32) -> (i32, i32) {
    %c0_i32 = arith.constant 0 : i32
    %c0_i32_0 = arith.constant 0 : i32
    return %c0_i32, %arg0 : i32, i32
  }
  func.func @transform_3(%arg0: i32, %arg1: i32) -> (i32, i32) {
    %c0_i32 = arith.constant 0 : i32
    %c0_i32_0 = arith.constant 0 : i32
    return %arg1, %c0_i32 : i32, i32
  }
  func.func @transform_4(%arg0: i32, %arg1: i32) -> (i32, i32) {
    %c0_i32 = arith.constant 0 : i32
    %c0_i32_0 = arith.constant 0 : i32
    return %c0_i32, %arg0 : i32, i32
  }
  func.func @transform_5(%arg0: i32, %arg1: i32) -> (i32, i32) {
    %c0_i32 = arith.constant 0 : i32
    %c0_i32_0 = arith.constant 0 : i32
    return %c0_i32, %arg0 : i32, i32
  }
  func.func @transform_6(%arg0: i32, %arg1: i32) -> (i32, i32) {
    %c0_i32 = arith.constant 0 : i32
    %c0_i32_0 = arith.constant 0 : i32
    return %c0_i32, %arg0 : i32, i32
  }
}

</mosaic_0001>

<bundles_post_ra>
// kernel: tpu_custom_call.1
= control target key start
LH: loop header
LB: loop body
LE: loop exit
PB: predicated region body
PF: predicated region fallthrough
CT: control target
= control target key end

     0   :  { %12 = vsyncpa [#allocation7], 0  ;;  %vm29_vm0 = vcmask 122880   ;;  %v365_v0 = vmov 0.0   ;;  %vm366_vm1 = vmmov 0   ;;  %v367_v3 = vmov 0   ;;  %s492_s0 = inlined_call_operand.vmem [shape: bf16[16,128], index: 0, kind: input, shape index: {}]   ;;  %s493_s1 = inlined_call_operand.vmem [shape: bf16[16,128], index: 1, kind: input, shape index: {}]   ;;  %s494_s2 = inlined_call_operand.vmem [shape: s32[1,16], index: 2, kind: input, shape index: {}]   ;;  %s495_s3 = inlined_call_operand.vmem [shape: s32[16,1], index: 3, kind: input, shape index: {}]   ;;  %s496_s4 = inlined_call_operand.vmem [shape: f32[1,16], index: 4, kind: input, shape index: {}]   ;;  %s497_s5 = inlined_call_operand.hbm [shape: f32[1,16], index: 5, kind: output, shape index: {0}]   ;;  %s498_s6 = inlined_call_operand.hbm [shape: f32[1,16], index: 6, kind: output, shape index: {1}]  }
   0x1   :  { %31 = vst.msk [vmem:[#allocation3] sm:$0x1] %vm29_vm0, %v365_v0  ;;  %296 = vmatprep.subr.bf16.mxu0 %v365_v0  ;;  %32 = vst.msk [vmem:[#allocation4] sm:$0x1] %vm29_vm0, %v365_v0  ;;  %v309_v1 = vld [vmem:[%s492_s0] sm:$0xff]   ;;  %298 = vmatprep.mubr.msk.bf16.mxu0 %vm366_vm1, %v365_v0 }
   0x2   :  { %33 = vst.msk [vmem:[#allocation5] sm:$0x1] %vm29_vm0, %v365_v0  ;;  %v118_v2 = vld [vmem:[%s495_s3] sm:$0xff]  ;;  %297 = vmatpush3.bf16.xpose.msra.mxu0 %v309_v1  ;;  %308 = vset.pattern.permute.xlu0 %v367_v3 }
   0x3   :  { %13 = vsyncpa [#allocation9], 0  ;;  %122 = vperm.xlu0 %308, %v118_v2   ;;  %v119_v4 = vld [vmem:[%s495_s3 + $0x8] sm:$0xff]  ;;  %v310_v5 = vld [vmem:[%s493_s1] sm:$0xff]   ;;  %v368_v6 = vmov -1e+30   ;;  %v107_v7 = vlaneseq }
   0x4   :  { %30 = vst.msk [vmem:[#allocation2] sm:$0x1] %vm29_vm0, %v368_v6  ;;  %v293_v10 = vld [vmem:[%s494_s2] ss:$0 sm:$0xff]  ;;  %vm92_vm6 = vcmask 130048   ;;  %s369_s3 = smov [#allocation8]  }
   0x5   :  { %v422_v8 = vshrl.u32 %v107_v7, 7  ;;  %v424_v9 = vand.u32 127, %v107_v7  ;;  %v460_v29 = vld [vmem:[%s496_s4] sm:$0x1]  ;;  %s279_s30 = sshll.u32 %s369_s3, 4  ;;  %s280_s30 = int_to_ptr.vmem [resolvable:$true] %s279_s30 }
   0x6   :  { %262 = vst.msk [vmem:[#allocation8] sm:$0x1] %vm29_vm0, %v460_v29  ;;  %s321_s7 = scalar_lea.vmem %s280_s30, 16  ;;  %s325_s8 = scalar_lea.vmem %s280_s30, 32 }
   0x7   :  { %125 = vperm.xlu0 %308, %v119_v4   ;;  %vm159_vm2 = vcmp.ne.s32.totalorder %v422_v8, %v424_v9  ;;  %v432_v11 = vadd.s32 8, %v422_v8  ;;  %p322_p0 = scmp.ne.s32.totalorder %s280_s30, %s321_s7  ;;  %p326_p1 = scmp.lt.s32.totalorder %s280_s30, %s280_s30 }
   0x8   :  { %p327_p2 = scmp.lt.s32.totalorder %s325_s8, %s321_s7 }
   0x9   :  { %299 = vmatmul.mubr.bf16.vlgmr.msra.gmra.mxu0 %v310_v5  ;;  %vm160_vm5 = vcmp.ne.s32.totalorder %v432_v11, %v424_v9  ;;  %v138_v26 = vld [vmem:[#allocation5] sm:$0x1] }
   0xa   :  { %p328_p3 = por %p327_p2, %p326_p1 }
   0xc   :  { %p329_p4 = pnand %p328_p3, %p322_p0 }
  0x7e   :  { %v123_v12 = vpop.permute.xlu0 %122 }
  0x7f   :  { %vm131_vm3 = vcmp.eq.s32.totalorder %v123_v12, %v293_v10 }
  0x80   :  { %vm437_vm4 = vmand %vm131_vm3, %vm159_vm2 }
  0x81   :  { %v189_v14 = vsel %vm437_vm4, 1.0, %v365_v0 }
  0x82   :  { %v126_v15 = vpop.permute.xlu0 %125  ;;  %v191_v16 = vsel %vm92_vm6, %v189_v14, 0.0 }
  0x83   :  { %vm132_vm7 = vcmp.eq.s32.totalorder %v126_v15, %v293_v10 }
  0x84   :  { %vm449_vm8 = vmand %vm132_vm7, %vm160_vm5 }
  0x85   :  { %v190_v18 = vsel %vm449_vm8, 1.0, %v365_v0 }
  0x86   :  { %v192_v19 = vsel %vm92_vm6, %v190_v18, 0.0 }
  0x87   :  { %v193_v20 = vadd.f32 %v192_v19, %v191_v16 }
  0x89   :  { %v194_v21 = vrot.slane %v193_v20, 4 }
  0x8b   :  { %v195_v22 = vadd.f32 %v194_v21, %v193_v20 }
  0x8d   :  { %v196_v23 = vrot.slane %v195_v22, 2 }
  0x8f   :  { %v197_v24 = vadd.f32 %v196_v23, %v195_v22 }
  0x91   :  { %v198_v25 = vrot.slane %v197_v24, 1 }
  0x93   :  { %v199_v27 = vadd.f32 %v198_v25, %v197_v24 }
  0x95   :  { %v200_v28 = vadd.f32 %v199_v27, %v138_v26 }
  0x97   :  { %201 = vst.msk [vmem:[#allocation5] sm:$0x1] %vm29_vm0, %v200_v28 }
  0x98   :  { %332 = shalt.err (!%p329_p4)
}
  0x99   :  { %282 = dma.vmem_to_hbm [thread:$0]  %s280_s30, 16, %s498_s6, [#allocation9]   ;;  %v91_v51 = vld [vmem:[#allocation2] sm:$0x1]  ;;  %v109_v54 = vsub.s32 0, %v422_v8 }
  0x9a   :  { %v137_v55 = vld [vmem:[#allocation4] sm:$0x1]  ;;  %v135_v17 = vld [vmem:[#allocation3] sm:$0x1]  ;;  %s370_s4 = smov [#allocation6]  }
  0x9b   :  { %s269_s6 = sshll.u32 %s370_s4, 4  ;;  %s270_s6 = int_to_ptr.vmem [resolvable:$true] %s269_s6 }
  0x9c   :  { %s341_s11 = scalar_lea.vmem %s270_s6, 16  ;;  %s345_s12 = scalar_lea.vmem %s270_s6, 32 }
  0x9d   :  { %p342_p5 = scmp.ne.s32.totalorder %s270_s6, %s341_s11  ;;  %p346_p6 = scmp.lt.s32.totalorder %s270_s6, %s270_s6 }
  0x9e   :  { %v245_v21 = vld [vmem:[#allocation5] sm:$0x1]  ;;  %p347_p7 = scmp.lt.s32.totalorder %s345_s12, %s341_s11 }
  0x9f   :  { %vm251_vm9 = vcmp.lt.f32.partialorder %v245_v21, 1e-06 }
  0xa0   :  { %v252_v11 = vsel %vm251_vm9, 1.0, %v245_v21  ;;  %p348_p8 = por %p347_p7, %p346_p6 }
  0xa2   :  { %p349_p9 = pnand %p348_p8, %p342_p5 }
  0xc9   :  { %v84_v30 = vpop.f32.mrf.mxu0 }
  0xca   :  { %v176_v32 = vsel %vm437_vm4, %v84_v30, 0.0  ;;  %v93_v34 = vsel %vm92_vm6, %v84_v30, -inf }
  0xcb   :  { %v300_v31 = vpop.f32.mrf.mxu0  ;;  %v178_v37 = vsel %vm92_vm6, %v176_v32, 0.0 }
  0xcd   :  { %v87_v33 = vpop.f32.mrf.mxu0 }
  0xce   :  { %v94_v35 = vsel %vm92_vm6, %v87_v33, -inf  ;;  %v177_v36 = vsel %vm449_vm8, %v87_v33, 0.0 }
  0xcf   :  { %v95_v38 = vmax.f32 %v93_v34, %v94_v35  ;;  %v179_v39 = vsel %vm92_vm6, %v177_v36, 0.0  ;;  %v301_v40 = vpop.f32.mrf.mxu0 }
  0xd0   :  { %v180_v41 = vadd.f32 %v179_v39, %v178_v37 }
  0xd1   :  { %v96_v42 = vrot.slane %v95_v38, 4 }
  0xd2   :  { %v181_v43 = vrot.slane %v180_v41, 4 }
  0xd3   :  { %v97_v44 = vmax.f32 %v95_v38, %v96_v42 }
  0xd4   :  { %v182_v45 = vadd.f32 %v181_v43, %v180_v41 }
  0xd5   :  { %v98_v46 = vrot.slane %v97_v44, 2 }
  0xd6   :  { %v183_v47 = vrot.slane %v182_v45, 2 }
  0xd7   :  { %v99_v48 = vmax.f32 %v97_v44, %v98_v46 }
  0xd8   :  { %v184_v49 = vadd.f32 %v183_v47, %v182_v45 }
  0xd9   :  { %v100_v50 = vrot.slane %v99_v48, 1 }
  0xda   :  { %v185_v52 = vrot.slane %v184_v49, 1 }
  0xdb   :  { %v101_v53 = vmax.f32 %v99_v48, %v100_v50 }
  0xdc   :  { %v186_v56 = vadd.f32 %v185_v52, %v184_v49 }
  0xdd   :  { %v102_v57 = vmax.f32 %v91_v51, %v101_v53 }
  0xde   :  { %v187_v58 = vadd.f32 %v186_v56, %v137_v55 }
  0xdf   :  { %v110_v59 = vrot.slane %v102_v57, %v109_v54  ;;  %134 = vst.msk [vmem:[#allocation2] sm:$0x1] %vm29_vm0, %v102_v57  ;;  %v103_v0 = vsub.f32 %v91_v51, %v102_v57 }
  0xe0   :  { %188 = vst.msk [vmem:[#allocation4] sm:$0x1] %vm29_vm0, %v187_v58 }
  0xe1   :  { %v112_v60 = vsub.f32 %v84_v30, %v110_v59  ;;  %v113_v61 = vsub.f32 %v87_v33, %v110_v59  ;;  %v104_v1 = vmul.f32 1.442695, %v103_v0 }
  0xe3   :  { %v114_v62 = vmul.f32 1.442695, %v112_v60  ;;  %v116_v63 = vmul.f32 1.442695, %v113_v61 }
  0xe5   :  { %311 = vpow2.f32 %v114_v62 }
  0xe6   :  { %313 = vpow2.f32 %v116_v63  ;;  %v246_v24 = vld [vmem:[#allocation2] sm:$0x1] }
  0xe7   :  { %315 = vpow2.f32 %v104_v1  ;;  %v253_v27 = vld [vmem:[#allocation4] sm:$0x1] }
  0xf2   :  { %v312_v2 = vpop.eup %311 }
  0xf3   :  { %v314_v3 = vpop.eup %313  ;;  %v163_v4 = vsel %vm159_vm2, %v312_v2, 0.0 }
  0xf4   :  { %v164_v5 = vsel %vm160_vm5, %v314_v3, 0.0  ;;  %v165_v6 = vsel %vm92_vm6, %v163_v4, 0.0  ;;  %v316_v16 = vpop.eup %315 }
  0xf5   :  { %v166_v7 = vsel %vm92_vm6, %v164_v5, 0.0  ;;  %v136_v19 = vmul.f32 %v316_v16, %v135_v17 }
  0xf6   :  { %v167_v10 = vadd.f32 %v166_v7, %v165_v6 }
  0xf8   :  { %v168_v12 = vrot.slane %v167_v10, 4 }
  0xfa   :  { %v169_v13 = vadd.f32 %v168_v12, %v167_v10 }
  0xfc   :  { %v170_v14 = vrot.slane %v169_v13, 2 }
  0xfe   :  { %v171_v15 = vadd.f32 %v170_v14, %v169_v13 }
 0x100   :  { %v172_v18 = vrot.slane %v171_v15, 1 }
 0x102   :  { %v173_v20 = vadd.f32 %v172_v18, %v171_v15 }
 0x104   :  { %v174_v8 = vadd.f32 %v173_v20, %v136_v19 }
 0x106   :  { %175 = vst.msk [vmem:[#allocation3] sm:$0x1] %vm29_vm0, %v174_v8 }
 0x10d   :  { %v247_v9 = vld [vmem:[#allocation3] sm:$0x1] }
 0x10e   :  { %317 = vlog2.f32 %v247_v9 }
 0x10f   :  { %319 = vrcp.f32 %v252_v11 }
 0x11b   :  { %v318_v22 = vpop.eup %317 }
 0x11c   :  { %v249_v23 = vmul.f32 0.6931472, %v318_v22  ;;  %v320_v30 = vpop.eup %319 }
 0x11e   :  { %v250_v25 = vadd.f32 %v249_v23, %v246_v24 }
 0x120   :  { %v254_v26 = vmul.f32 %v250_v25, %v245_v21 }
 0x122   :  { %v255_v28 = vsub.f32 %v253_v27, %v254_v26 }
 0x124   :  { %v257_v31 = vmul.f32 %v320_v30, %v255_v28 }
 0x126   :  { %v259_v32 = vmul.f32 -1.0, %v257_v31 }
 0x128   :  { %v260_v33 = vmul.f32 %v259_v32, %v460_v29 }
 0x12a   :  { %261 = vst.msk [vmem:[#allocation6] sm:$0x1] %vm29_vm0, %v260_v33 }
 0x12b   :  { %352 = shalt.err (!%p349_p9)
}
 0x12c   :  { %272 = dma.vmem_to_hbm [thread:$0]  %s270_s6, 16, %s497_s5, [#allocation7]  }
 0x12d   :  { %361 = dma.done.wait [#allocation7], 16  }
 0x12e   :  { %362 = vsyncadd [#allocation7], 4294967280 }
 0x12f   :  { %363 = dma.done.wait [#allocation9], 16  }
 0x130   :  { %364 = vsyncadd [#allocation9], 4294967280 }
 0x131   :  { %289 = vsyncpa [#allocation7], 1 }
 0x132   :  { %290 = vsyncpa [#allocation9], 1 }

</bundles_post_ra>
